<compile_context>
chip_gen: v5e
topology: v5e:2x2
jax: 0.10.0
libtpu: 0.0.40
codegen_flags: <defaults>
</compile_context>

<pallas_src>
import jax
import jax.numpy as jnp
from jax.experimental import pallas as pl
from jax.experimental.pallas import tpu as pltpu

EPS = 1e-5

# Single-buffer grid-invariant operands (halves their VMEM footprint).
_SINGLE_BUFFER_RESIDENT = True


# ----------------------------- Pallas kernels ------------------------------

def _add_ln_into_scratch(residual_f32, w_ref, b_ref, x_ref, res_ref):
    """residual -> LayerNorm -> normed-activation scratch + fp32 residual out."""
    mean = jnp.mean(residual_f32, axis=-1, keepdims=True)
    cent = residual_f32 - mean
    var = jnp.mean(cent * cent, axis=-1, keepdims=True)      # biased, like torch LN
    normed = cent * jax.lax.rsqrt(var + EPS) * w_ref[...] + b_ref[...]
    x_ref[...] = normed.astype(x_ref.dtype)                   # activation dtype -> MXU
    res_ref[...] = residual_f32.astype(res_ref.dtype)


def _mixer_matmul(x_ref, mw_ref, mb_ref, y_ref):
    # Both MXU operands are in the activation dtype; accumulate in f32, add the
    # fp32 bias, cast once for the store.
    acc = jnp.dot(x_ref[...], mw_ref[...], preferred_element_type=jnp.float32)
    y_ref[...] = (acc + mb_ref[...]).astype(y_ref.dtype)


def block_kernel_with_residual(h_ref, r_ref, w_ref, b_ref, mw_ref, mb_ref,
                               y_ref, res_ref, x_ref):
    @pl.when(pl.program_id(1) == 0)                 # add + LN once per row tile
    def _():
        residual = r_ref[...].astype(jnp.float32) + h_ref[...].astype(jnp.float32)
        _add_ln_into_scratch(residual, w_ref, b_ref, x_ref, res_ref)
    _mixer_matmul(x_ref, mw_ref, mb_ref, y_ref)


def block_kernel_no_residual(h_ref, w_ref, b_ref, mw_ref, mb_ref,
                             y_ref, res_ref, x_ref):
    @pl.when(pl.program_id(1) == 0)
    def _():
        _add_ln_into_scratch(h_ref[...].astype(jnp.float32), w_ref, b_ref,
                             x_ref, res_ref)
    _mixer_matmul(x_ref, mw_ref, mb_ref, y_ref)


# ------------------------------ JAX wrapper ---------------------------------

def _vmem_budget():
    """~3/4 of per-core VMEM: ~96 MiB on v5e/v6e (128 MiB), ~48 MiB on v7x (64 MiB)."""
    try:
        cap = int(pltpu.get_tpu_info().vmem_capacity_bytes)
    except Exception:
        cap = 0
    if cap <= 0 or cap > 128 * 1024 * 1024:
        cap = 64 * 1024 * 1024                      # conservative default (v7x)
    return (cap * 3) // 4


def _resident_spec(block_shape, index_map, single_buffer):
    """BlockSpec for a grid-invariant operand; single-buffered when supported."""
    if single_buffer:
        try:
            return pl.BlockSpec(block_shape, index_map, pipeline_mode=pl.Buffered(1))
        except Exception:                            # older jax: fall back silently
            pass
    return pl.BlockSpec(block_shape, index_map)


def _choose_tiles(n_rows, d, h_item, r_item, out_item, w_item, budget):
    """Pick (tm, tn): row tile and mixer-weight column tile, sized against VMEM.

    Accounts for double-buffering of the streamed row blocks, single/double
    buffering of the resident operands, the normed-activation scratch, the fp32
    LayerNorm temporaries and the f32 accumulator.
    """
    sub = 8 if h_item >= 4 else (16 if h_item == 2 else 32)

    # Column tile: keep the whole D x D mixer weight resident when it fits
    # comfortably; otherwise stream (double-buffered) column blocks of it.
    wbuf_res = 1 if _SINGLE_BUFFER_RESIDENT else 2
    w_cap = budget // 3
    if d <= 256 or d * d * w_item * wbuf_res <= w_cap:
        tn, wbuf = d, wbuf_res
    else:
        tn = (w_cap // (2 * d * w_item)) // 128 * 128
        tn = max(128, min(tn, d))
        wbuf = 2

    resident = (wbuf * (d * tn * w_item + tn * 4)              # mixer W + bias
                + wbuf_res * 2 * d * 4)                        # LN scale + bias

    per_row = (2 * d * (h_item + r_item)        # streamed inputs  (double buffered)
               + 2 * (d * 4 + tn * out_item)    # streamed outputs (double buffered)
               + d * h_item                     # normed-activation scratch
               + 3 * d * 4                      # fp32 LN temporaries
               + tn * 4)                        # fp32 matmul accumulator
    avail = max(budget - resident, per_row * sub)
    tm = (avail // per_row) // sub * sub
    tm = max(sub, min(tm, 1024))                # lands at 256-1024 for real dims
    tm = min(tm, -(-n_rows // sub) * sub)       # never exceed (rounded) row count
    return tm, tn


def block_forward(hidden_states, residual, params, *, donate_residual=False):
    """Pallas equivalent of Block.forward (residual_in_fp32=True, drop_path=0)."""
    B, L, D = hidden_states.shape
    N = B * L
    dtype = hidden_states.dtype
    h_item = jnp.dtype(dtype).itemsize
    r_item = 0 if residual is None else jnp.dtype(residual.dtype).itemsize

    budget = _vmem_budget()
    tm, tn = _choose_tiles(N, D, h_item, r_item, h_item, h_item, budget)
    grid = (pl.cdiv(N, tm), pl.cdiv(D, tn))
    weight_resident = grid[1] == 1

    h2 = hidden_states.reshape(N, D)
    w2 = params["norm_w"].reshape(1, D).astype(jnp.float32)
    b2 = params["norm_b"].reshape(1, D).astype(jnp.float32)
    mw = params["mix_w"].astype(dtype)            # activation-dtype MXU operands
    mb = params["mix_b"].reshape(1, D).astype(jnp.float32)
    w_item = jnp.dtype(mw.dtype).itemsize

    row_in_spec = pl.BlockSpec((tm, D), lambda i, j: (i, 0))
    w_spec = _resident_spec((1, D), lambda i, j: (0, 0), _SINGLE_BUFFER_RESIDENT)
    b_spec = _resident_spec((1, D), lambda i, j: (0, 0), _SINGLE_BUFFER_RESIDENT)
    mw_spec = _resident_spec((D, tn), lambda i, j: (0, j),
                             _SINGLE_BUFFER_RESIDENT and weight_resident)
    mb_spec = _resident_spec((1, tn), lambda i, j: (0, j),
                             _SINGLE_BUFFER_RESIDENT and weight_resident)
    y_spec = pl.BlockSpec((tm, tn), lambda i, j: (i, j))
    res_spec = pl.BlockSpec((tm, D), lambda i, j: (i, 0))

    out_shape = (jax.ShapeDtypeStruct((N, D), dtype),         # mixer output
                 jax.ShapeDtypeStruct((N, D), jnp.float32))    # residual (fp32)
    out_specs = (y_spec, res_spec)
    scratch_shapes = [pltpu.VMEM((tm, D), dtype)]              # normed activations

    compiler_params = pltpu.CompilerParams(
        dimension_semantics=("parallel", "arbitrary"),   # rows across v7x cores
        vmem_limit_bytes=budget,
    )

    w_bytes = D * D * w_item * (1 if weight_resident else grid[0])
    bytes_accessed = int(N * D * (h_item + r_item)     # streamed inputs
                         + N * D * (h_item + 4)        # y + fp32 residual out
                         + w_bytes + 3 * D * 4)
    cost = pl.CostEstimate(flops=2 * N * D * D + 8 * N * D,
                           transcendentals=N,
                           bytes_accessed=bytes_accessed)

    if residual is None:
        y, res = pl.pallas_call(
            block_kernel_no_residual,
            grid=grid,
            in_specs=[row_in_spec, w_spec, b_spec, mw_spec, mb_spec],
            out_specs=out_specs,
            out_shape=out_shape,
            scratch_shapes=scratch_shapes,
            compiler_params=compiler_params,
            cost_estimate=cost,
        )(h2, w2, b2, mw, mb)
    else:
        r2 = residual.reshape(N, D)
        # Alias fp32 residual in -> fp32 residual out only when the caller
        # actually donates the buffer (otherwise XLA would insert a copy).
        aliases = ({1: 1} if (donate_residual and r2.dtype == jnp.float32) else {})
        y, res = pl.pallas_call(
            block_kernel_with_residual,
            grid=grid,
            in_specs=[row_in_spec, row_in_spec, w_spec, b_spec, mw_spec, mb_spec],
            out_specs=out_specs,
            out_shape=out_shape,
            scratch_shapes=scratch_shapes,
            compiler_params=compiler_params,
            cost_estimate=cost,
            input_output_aliases=aliases,
        )(h2, r2, w2, b2, mw, mb)

    return y.reshape(B, L, D), res.reshape(B, L, D)


# --------------------------------- main --------------------------------------

if __name__ == "__main__":
    B, L, D = 2, 8, 32  # batch, seq, hidden dim

    key = jax.random.PRNGKey(0)
    k_h, k_w = jax.random.split(key, 2)

    hidden_states = jax.random.normal(k_h, (B, L, D), dtype=jnp.float32)

    params = {
        # nn.LayerNorm default init: weight=1, bias=0
        "norm_w": jnp.ones((D,), jnp.float32),
        "norm_b": jnp.zeros((D,), jnp.float32),
        # deterministic Linear(dim, dim) mixer weights
        "mix_w": (jax.random.normal(k_w, (D, D), jnp.float32)
                  / jnp.sqrt(jnp.float32(D))),
        "mix_b": jnp.zeros((D,), jnp.float32),
    }

    fwd = jax.jit(block_forward, static_argnames=("donate_residual",))

    # first block: residual is None; subsequent block: residual provided
    h1, r1 = fwd(hidden_states, None, params)
    h2, r2 = fwd(h1, r1, params)
    jax.block_until_ready((h1, r1, h2, r2))

    # plain-JAX reference
    def ref(h, r):
        res = (h if r is None else r + h).astype(jnp.float32)
        mu = res.mean(-1, keepdims=True)
        var = ((res - mu) ** 2).mean(-1, keepdims=True)
        y = (res - mu) / jnp.sqrt(var + EPS) * params["norm_w"] + params["norm_b"]
        return y @ params["mix_w"] + params["mix_b"], res

    rh1, rr1 = ref(hidden_states, None)
    rh2, rr2 = ref(h1, r1)
    assert jnp.allclose(h1, rh1, atol=1e-4, rtol=1e-4)
    assert jnp.allclose(r1, rr1, atol=1e-5, rtol=1e-5)
    assert jnp.allclose(h2, rh2, atol=1e-4, rtol=1e-4)
    assert jnp.allclose(r2, rr2, atol=1e-5, rtol=1e-5)

    # bf16 activations exercise the pure-bf16 MXU fast path (weights cast in wrapper)
    hb = hidden_states.astype(jnp.bfloat16)
    hb1, rb1 = fwd(hb, None, params)
    hb2, rb2 = fwd(hb1, rb1, params)
    jax.block_until_ready((hb1, rb1, hb2, rb2))
    bh1, br1 = ref(hb.astype(jnp.float32), None)
    bh2, br2 = ref(hb1.astype(jnp.float32), rb1)
    assert jnp.allclose(hb1.astype(jnp.float32), bh1, atol=1e-1, rtol=1e-1)
    assert jnp.allclose(rb1, br1, atol=1e-5, rtol=1e-5)
    assert jnp.allclose(hb2.astype(jnp.float32), bh2, atol=1e-1, rtol=1e-1)
    assert jnp.allclose(rb2, br2, atol=1e-5, rtol=1e-5)

    print("KERNEL_OK")
</pallas_src>

<mosaic_0001>
module attributes {stable_mosaic.version = 11 : i64} {
  func.func @block_kernel_no_residual(%arg0: i32, %arg1: i32, %arg2: memref<16x32xf32, #tpu.memory_space<vmem>>, %arg3: memref<1x32xf32, #tpu.memory_space<vmem>>, %arg4: memref<1x32xf32, #tpu.memory_space<vmem>>, %arg5: memref<32x32xf32, #tpu.memory_space<vmem>>, %arg6: memref<1x32xf32, #tpu.memory_space<vmem>>, %arg7: memref<16x32xf32, #tpu.memory_space<vmem>>, %arg8: memref<16x32xf32, #tpu.memory_space<vmem>>, %arg9: memref<16x32xf32, #tpu.memory_space<vmem>>) attributes {dimension_semantics = [#tpu.dimension_semantics<parallel>, #tpu.dimension_semantics<arbitrary>], iteration_bounds = array<i64: 1, 1>, scalar_prefetch = 0 : i64, scratch_operands = 1 : i64, tpu.core_type = #tpu.core_type<tc>, window_params = [{transform_indices = @transform_0, window_bounds = array<i64: 16, 32>}, {pipeline_mode = #tpu.pipeline_mode<synchronous>, transform_indices = @transform_1, window_bounds = array<i64: 1, 32>}, {pipeline_mode = #tpu.pipeline_mode<synchronous>, transform_indices = @transform_2, window_bounds = array<i64: 1, 32>}, {pipeline_mode = #tpu.pipeline_mode<synchronous>, transform_indices = @transform_3, window_bounds = array<i64: 32, 32>}, {pipeline_mode = #tpu.pipeline_mode<synchronous>, transform_indices = @transform_4, window_bounds = array<i64: 1, 32>}, {transform_indices = @transform_5, window_bounds = array<i64: 16, 32>}, {transform_indices = @transform_6, window_bounds = array<i64: 16, 32>}]} {
    %c0_i32 = arith.constant 0 : i32
    %0 = arith.cmpi eq, %arg1, %c0_i32 : i32
    %1 = arith.extui %0 : i1 to i32
    %c0_i32_0 = arith.constant 0 : i32
    %2 = arith.cmpi ne, %1, %c0_i32_0 : i32
    scf.if %2 {
      %c0_8 = arith.constant 0 : index
      %c0_9 = arith.constant 0 : index
      %10 = vector.load %arg2[%c0_8, %c0_9] : memref<16x32xf32, #tpu.memory_space<vmem>>, vector<16x32xf32>
      %cst_10 = arith.constant dense<0.000000e+00> : vector<16xf32>
      %11 = vector.multi_reduction <add>, %10, %cst_10 [1] : vector<16x32xf32> to vector<16xf32>
      %12 = vector.shape_cast %11 : vector<16xf32> to vector<16x1xf32>
      %cst_11 = arith.constant 3.200000e+01 : f32
      %13 = vector.broadcast %cst_11 : f32 to vector<16x1xf32>
      %14 = arith.divf %12, %13 : vector<16x1xf32>
      %15 = vector.broadcast %14 : vector<16x1xf32> to vector<16x32xf32>
      %16 = arith.subf %10, %15 : vector<16x32xf32>
      %17 = arith.mulf %16, %16 : vector<16x32xf32>
      %cst_12 = arith.constant dense<0.000000e+00> : vector<16xf32>
      %18 = vector.multi_reduction <add>, %17, %cst_12 [1] : vector<16x32xf32> to vector<16xf32>
      %19 = vector.shape_cast %18 : vector<16xf32> to vector<16x1xf32>
      %cst_13 = arith.constant 3.200000e+01 : f32
      %20 = vector.broadcast %cst_13 : f32 to vector<16x1xf32>
      %21 = arith.divf %19, %20 : vector<16x1xf32>
      %cst_14 = arith.constant 9.99999974E-6 : f32
      %22 = vector.broadcast %cst_14 : f32 to vector<16x1xf32>
      %23 = arith.addf %21, %22 : vector<16x1xf32>
      %24 = math.rsqrt %23 : vector<16x1xf32>
      %25 = vector.broadcast %24 : vector<16x1xf32> to vector<16x32xf32>
      %26 = arith.mulf %16, %25 : vector<16x32xf32>
      %c0_15 = arith.constant 0 : index
      %c0_16 = arith.constant 0 : index
      %27 = vector.load %arg3[%c0_15, %c0_16] : memref<1x32xf32, #tpu.memory_space<vmem>>, vector<1x32xf32>
      %28 = vector.broadcast %27 : vector<1x32xf32> to vector<16x32xf32>
      %29 = arith.mulf %26, %28 : vector<16x32xf32>
      %c0_17 = arith.constant 0 : index
      %c0_18 = arith.constant 0 : index
      %30 = vector.load %arg4[%c0_17, %c0_18] : memref<1x32xf32, #tpu.memory_space<vmem>>, vector<1x32xf32>
      %31 = vector.broadcast %30 : vector<1x32xf32> to vector<16x32xf32>
      %32 = arith.addf %29, %31 : vector<16x32xf32>
      %c0_19 = arith.constant 0 : index
      %c0_20 = arith.constant 0 : index
      %33 = vector.load %arg9[%c0_19, %c0_20] : memref<16x32xf32, #tpu.memory_space<vmem>>, vector<16x32xf32>
      tpu.vector_store %arg9[%c0_19, %c0_20], %32 {strides = array<i32>} : memref<16x32xf32, #tpu.memory_space<vmem>>, vector<16x32xf32>,
      %c0_21 = arith.constant 0 : index
      %c0_22 = arith.constant 0 : index
      %34 = vector.load %arg8[%c0_21, %c0_22] : memref<16x32xf32, #tpu.memory_space<vmem>>, vector<16x32xf32>
      tpu.vector_store %arg8[%c0_21, %c0_22], %10 {strides = array<i32>} : memref<16x32xf32, #tpu.memory_space<vmem>>, vector<16x32xf32>,
    } else {
    }
    %c0 = arith.constant 0 : index
    %c0_1 = arith.constant 0 : index
    %3 = vector.load %arg9[%c0, %c0_1] : memref<16x32xf32, #tpu.memory_space<vmem>>, vector<16x32xf32>
    %c0_2 = arith.constant 0 : index
    %c0_3 = arith.constant 0 : index
    %4 = vector.load %arg5[%c0_2, %c0_3] : memref<32x32xf32, #tpu.memory_space<vmem>>, vector<32x32xf32>
    %cst = arith.constant dense<0.000000e+00> : vector<16x32xf32>
    %5 = tpu.matmul %3, %4, %cst {dimension_numbers = #tpu.dot_dimension_numbers<[1], [0], [0], [1], [0, 0, 1, 1], [], []>} : vector<16x32xf32>, vector<32x32xf32>, vector<16x32xf32> -> vector<16x32xf32>
    %c0_4 = arith.constant 0 : index
    %c0_5 = arith.constant 0 : index
    %6 = vector.load %arg6[%c0_4, %c0_5] : memref<1x32xf32, #tpu.memory_space<vmem>>, vector<1x32xf32>
    %7 = vector.broadcast %6 : vector<1x32xf32> to vector<16x32xf32>
    %8 = arith.addf %5, %7 : vector<16x32xf32>
    %c0_6 = arith.constant 0 : index
    %c0_7 = arith.constant 0 : index
    %9 = vector.load %arg7[%c0_6, %c0_7] : memref<16x32xf32, #tpu.memory_space<vmem>>, vector<16x32xf32>
    tpu.vector_store %arg7[%c0_6, %c0_7], %8 {strides = array<i32>} : memref<16x32xf32, #tpu.memory_space<vmem>>, vector<16x32xf32>,
    return
  }
  func.func @transform_0(%arg0: i32, %arg1: i32) -> (i32, i32) {
    %c0_i32 = arith.constant 0 : i32
    %c0_i32_0 = arith.constant 0 : i32
    return %arg0, %c0_i32 : i32, i32
  }
  func.func @transform_1(%arg0: i32, %arg1: i32) -> (i32, i32) {
    %c0_i32 = arith.constant 0 : i32
    %c0_i32_0 = arith.constant 0 : i32
    %c0_i32_1 = arith.constant 0 : i32
    return %c0_i32, %c0_i32_0 : i32, i32
  }
  func.func @transform_2(%arg0: i32, %arg1: i32) -> (i32, i32) {
    %c0_i32 = arith.constant 0 : i32
    %c0_i32_0 = arith.constant 0 : i32
    %c0_i32_1 = arith.constant 0 : i32
    return %c0_i32, %c0_i32_0 : i32, i32
  }
  func.func @transform_3(%arg0: i32, %arg1: i32) -> (i32, i32) {
    %c0_i32 = arith.constant 0 : i32
    %c0_i32_0 = arith.constant 0 : i32
    return %c0_i32, %arg1 : i32, i32
  }
  func.func @transform_4(%arg0: i32, %arg1: i32) -> (i32, i32) {
    %c0_i32 = arith.constant 0 : i32
    %c0_i32_0 = arith.constant 0 : i32
    return %c0_i32, %arg1 : i32, i32
  }
  func.func @transform_5(%arg0: i32, %arg1: i32) -> (i32, i32) {
    %c0_i32 = arith.constant 0 : i32
    return %arg0, %arg1 : i32, i32
  }
  func.func @transform_6(%arg0: i32, %arg1: i32) -> (i32, i32) {
    %c0_i32 = arith.constant 0 : i32
    %c0_i32_0 = arith.constant 0 : i32
    return %arg0, %c0_i32 : i32, i32
  }
}

</mosaic_0001>

<bundles_post_ra>
// kernel: block_forward.1
= control target key start
LH: loop header
LB: loop body
LE: loop exit
PB: predicated region body
PF: predicated region fallthrough
CT: control target
= control target key end

     0   :  { %12 = vsyncpa [#allocation4], 0  ;;  %s423_s0 = inlined_call_operand.hbm [shape: f32[16,32], index: 0, kind: input, shape index: {}]   ;;  %s424_s1 = inlined_call_operand.vmem [shape: f32[1,32], index: 1, kind: input, shape index: {}]   ;;  %s425_s2 = inlined_call_operand.vmem [shape: f32[1,32], index: 2, kind: input, shape index: {}]   ;;  %s426_s3 = inlined_call_operand.hbm [shape: f32[32,32], index: 3, kind: input, shape index: {}]   ;;  %s427_s4 = inlined_call_operand.vmem [shape: f32[1,32], index: 4, kind: input, shape index: {}]   ;;  %s428_s5 = inlined_call_operand.hbm [shape: f32[16,32], index: 5, kind: output, shape index: {0}]   ;;  %s429_s6 = inlined_call_operand.hbm [shape: f32[16,32], index: 6, kind: output, shape index: {1}]  }
   0x1   :  { %13 = vsyncpa [#allocation7], 0 }
   0x2   :  { %14 = vsyncpa [#allocation5], 0 }
   0x3   :  { %15 = vsyncpa [#allocation10], 0  ;;  %s20_s23 = sshll.u32 %s423_s0, 4  ;;  %s336_s24 = smov [#allocation3]   ;;  %s21_s23 = int_to_ptr.hbm [resolvable:$true] %s20_s23 }
   0x4   :  { %s22_s25 = sshll.u32 %s336_s24, 4  ;;  %s37_s28 = sshll.u32 %s426_s3, 4  ;;  %s23_s25 = int_to_ptr.vmem [resolvable:$true] %s22_s25  ;;  %s38_s28 = int_to_ptr.hbm [resolvable:$true] %s37_s28 }
   0x5   :  { %s337_s29 = smov 128   ;;  %s338_s30 = smov 8  }
   0x6   :  { %28 = dma.hbm_to_vmem [thread:$0]  %s21_s23, 256, %s23_s25, [#allocation4], %s337_s29, %s337_s29, %s338_s30  }
   0x7   :  { %s339_s7 = smov [#allocation6]  }
   0x8   :  { %s39_s8 = sshll.u32 %s339_s7, 4  ;;  %s40_s8 = int_to_ptr.vmem [resolvable:$true] %s39_s8 }
   0x9   :  { %45 = dma.hbm_to_vmem [thread:$0]  %s38_s28, 512, %s40_s8, [#allocation7], %s337_s29, %s337_s29, %s338_s30  }
   0xa   :  { %328 = dma.done.wait [#allocation4], 256  }
   0xb   :  { %329 = vsyncadd [#allocation4], 4294967040 }
   0xc   :  { %330 = dma.done.wait [#allocation7], 512  }
   0xd   :  { %331 = vsyncadd [#allocation7], 4294966784  ;;  %vm62_vm0 = vcmask 261120   ;;  %v60_v0 = vld [vmem:[#allocation3] sm:$0xff]  ;;  %v61_v2 = vld [vmem:[#allocation3 + $0x8] sm:$0xff]  ;;  %v340_v4 = vmov 32.0  }
   0xe   :  { %v63_v1 = vsel %vm62_vm0, %v60_v0, 0.0  ;;  %128 = vst.msk [vmem:[#allocation9] sm:$0xff] %vm62_vm0, %v60_v0  ;;  %v66_v3 = vsel %vm62_vm0, %v61_v2, 0.0  ;;  %226 = vrcp.f32 %v340_v4  ;;  %v135_v21 = vld [vmem:[#allocation6 + $0x18] sm:$0xff]  ;;  %v134_v22 = vld [vmem:[#allocation6 + $0x10] sm:$0xff]  ;;  %v133_v25 = vld [vmem:[#allocation6 + $0x8] sm:$0xff] }
   0xf   :  { %64 = vadd.xlane.f32.xlu0 %v63_v1  ;;  %129 = vst.msk [vmem:[#allocation9 + $0x8] sm:$0xff] %vm62_vm0, %v61_v2  ;;  %159 = vmatpush.msra.mxu0 %v135_v21  ;;  %v132_v27 = vld [vmem:[#allocation6] sm:$0xff]  ;;  %s191_s13 = sshll.u32 %s429_s6, 4  ;;  %s342_s16 = smov [#allocation8]   ;;  %s192_s13 = int_to_ptr.hbm [resolvable:$true] %s191_s13 }
  0x10   :  { %212 = vmatpush.msra.mxu1 %v135_v21  ;;  %v223_v39 = vld [vmem:[%s424_s1] ss:$0 sm:$0xff]  ;;  %s341_s1 = smov [#allocation9]   ;;  %s176_s17 = sshll.u32 %s342_s16, 4  ;;  %s177_s17 = int_to_ptr.vmem [resolvable:$true] %s176_s17 }
  0x11   :  { %160 = vmatpush.msra.mxu0 %v134_v22  ;;  %v224_v42 = vld [vmem:[%s425_s2] ss:$0 sm:$0xff]  ;;  %s189_s2 = sshll.u32 %s341_s1, 4  ;;  %s178_s6 = sshll.u32 %s428_s5, 4  ;;  %s190_s2 = int_to_ptr.vmem [resolvable:$true] %s189_s2  ;;  %s179_s6 = int_to_ptr.hbm [resolvable:$true] %s178_s6 }
  0x12   :  { %213 = vmatpush.msra.mxu1 %v134_v22  ;;  %197 = dma.vmem_to_hbm [thread:$0]  %s190_s2, 256, %s192_s13, [#allocation10], %s337_s29, %s337_s29, %s338_s30  }
  0x13   :  { %161 = vmatpush.msra.mxu0 %v133_v25  ;;  %v225_v55 = vld [vmem:[%s427_s4] ss:$0 sm:$0xff] }
  0x14   :  { %v227_v5 = vpop.eup %226  ;;  %214 = vmatpush.msra.mxu1 %v133_v25 }
  0x15   :  { %v70_v6 = vmul.f32 32.0, %v227_v5  ;;  %vm74_vm1 = vweird.f32 %v227_v5  ;;  %162 = vmatpush.msra.mxu0 %v132_v27 }
  0x16   :  { %215 = vmatpush.msra.mxu1 %v132_v27 }
  0x17   :  { %67 = vadd.xlane.f32.xlu0 %v66_v3  ;;  %v71_v7 = vsub.f32 1.0, %v70_v6 }
  0x19   :  { %v72_v8 = vmul.f32 %v227_v5, %v71_v7 }
  0x1b   :  { %v73_v9 = vadd.f32 %v227_v5, %v72_v8 }
  0x1d   :  { %v75_v10 = vsel %vm74_vm1, %v227_v5, %v73_v9 }
  0x82   :  { %v65_v11 = vpop.xlane.xlu0 %64 }
  0x83   :  { %v76_v12 = vmul.f32 %v75_v10, %v65_v11 }
  0x85   :  { %v78_v13 = vsub.f32 %v60_v0, %v76_v12 }
  0x87   :  { %v80_v14 = vmul.f32 %v78_v13, %v78_v13 }
  0x89   :  { %v82_v15 = vsel %vm62_vm0, %v80_v14, 0.0 }
  0x8a   :  { %83 = vadd.xlane.f32.xlu1 %v82_v15  ;;  %v68_v16 = vpop.xlane.xlu0 %67 }
  0x8b   :  { %v77_v17 = vmul.f32 %v75_v10, %v68_v16 }
  0x8d   :  { %v79_v18 = vsub.f32 %v61_v2, %v77_v17 }
  0x8f   :  { %v81_v19 = vmul.f32 %v79_v18, %v79_v18 }
  0x91   :  { %v85_v20 = vsel %vm62_vm0, %v81_v19, 0.0 }
  0x92   :  { %86 = vadd.xlane.f32.xlu1 %v85_v20 }
  0xfd   :  { %v84_v23 = vpop.xlane.xlu1 %83 }
  0xfe   :  { %v88_v24 = vmul.f32 %v84_v23, %v75_v10 }
 0x100   :  { %v90_v26 = vadd.f32 1e-05, %v88_v24 }
 0x102   :  { %228 = vrsqrt.f32 %v90_v26  ;;  %vm98_vm3 = vweird.f32 %v90_v26 }
 0x105   :  { %v87_v28 = vpop.xlane.xlu1 %86 }
 0x106   :  { %v89_v29 = vmul.f32 %v87_v28, %v75_v10 }
 0x108   :  { %v229_v30 = vpop.eup %228  ;;  %v91_v31 = vadd.f32 1e-05, %v89_v29 }
 0x109   :  { %v93_v32 = vmul.f32 %v229_v30, %v90_v26  ;;  %vm99_vm2 = vweird.f32 %v229_v30 }
 0x10a   :  { %230 = vrsqrt.f32 %v91_v31  ;;  %vm100_vm4 = vmor %vm98_vm3, %vm99_vm2  ;;  %vm108_vm6 = vweird.f32 %v91_v31 }
 0x10b   :  { %v94_v33 = vmul.f32 %v229_v30, %v93_v32 }
 0x10d   :  { %v95_v34 = vmul.f32 0.5, %v94_v33 }
 0x10f   :  { %v96_v35 = vsub.f32 1.5, %v95_v34 }
 0x110   :  { %v231_v36 = vpop.eup %230 }
 0x111   :  { %v97_v37 = vmul.f32 %v229_v30, %v96_v35  ;;  %v103_v38 = vmul.f32 %v231_v36, %v91_v31  ;;  %vm109_vm5 = vweird.f32 %v231_v36 }
 0x112   :  { %vm110_vm7 = vmor %vm108_vm6, %vm109_vm5 }
 0x113   :  { %v101_v40 = vsel %vm100_vm4, %v229_v30, %v97_v37  ;;  %v104_v41 = vmul.f32 %v231_v36, %v103_v38 }
 0x114   :  { %v112_v43 = vmul.f32 %v101_v40, %v78_v13 }
 0x115   :  { %v105_v44 = vmul.f32 0.5, %v104_v41 }
 0x116   :  { %v118_v45 = vmul.f32 %v223_v39, %v112_v43 }
 0x117   :  { %v106_v46 = vsub.f32 1.5, %v105_v44 }
 0x118   :  { %v124_v47 = vadd.f32 %v224_v42, %v118_v45 }
 0x119   :  { %v107_v48 = vmul.f32 %v231_v36, %v106_v46 }
 0x11a   :  { %126 = vst.msk [vmem:[#allocation2] sm:$0xff] %vm62_vm0, %v124_v47 }
 0x11b   :  { %v111_v49 = vsel %vm110_vm7, %v231_v36, %v107_v48 }
 0x11c   :  { %v113_v50 = vmul.f32 %v111_v49, %v79_v18 }
 0x11e   :  { %v119_v51 = vmul.f32 %v223_v39, %v113_v50 }
 0x120   :  { %v125_v52 = vadd.f32 %v224_v42, %v119_v51 }
 0x121   :  { %v130_v53 = vld [vmem:[#allocation2] sm:$0xff] }
 0x122   :  { %127 = vst.msk [vmem:[#allocation2 + $0x8] sm:$0xff] %vm62_vm0, %v125_v52  ;;  %210 = vmatmul.msk.f32.vlgmr.msra.gmra.mxu0 %vm62_vm0, %v130_v53 }
 0x129   :  { %v131_v54 = vld [vmem:[#allocation2 + $0x8] sm:$0xff] }
 0x12a   :  { %211 = vmatmul.msk.f32.vlgmr.msra.gmra.mxu1 %vm62_vm0, %v131_v54 }
 0x19f   :  { %v164_v56 = vpop.f32.mrf.mxu0 }
 0x1a0   :  { %v165_v57 = vadd.f32 %v225_v55, %v164_v56 }
 0x1a2   :  { %170 = vst.msk [vmem:[#allocation8] sm:$0xff] %vm62_vm0, %v165_v57 }
 0x1a7   :  { %v167_v58 = vpop.f32.mrf.mxu1 }
 0x1a8   :  { %v168_v59 = vadd.f32 %v225_v55, %v167_v58 }
 0x1aa   :  { %171 = vst.msk [vmem:[#allocation8 + $0x8] sm:$0xff] %vm62_vm0, %v168_v59 }
 0x1ab   :  { %184 = dma.vmem_to_hbm [thread:$0]  %s177_s17, 256, %s179_s6, [#allocation5], %s337_s29, %s337_s29, %s338_s30  }
 0x1ac   :  { %332 = dma.done.wait [#allocation5], 256  }
 0x1ad   :  { %333 = vsyncadd [#allocation5], 4294967040 }
 0x1ae   :  { %334 = dma.done.wait [#allocation10], 256  }
 0x1af   :  { %335 = vsyncadd [#allocation10], 4294967040 }
 0x1b0   :  { %206 = vsyncpa [#allocation4], 1 }
 0x1b1   :  { %207 = vsyncpa [#allocation7], 1 }
 0x1b2   :  { %208 = vsyncpa [#allocation5], 1 }
 0x1b3   :  { %209 = vsyncpa [#allocation10], 1 }

</bundles_post_ra>
